<compile_context>
chip_gen: v7x
topology: tpu7x:2x2x1
jax: 0.10.0
libtpu: 0.0.40
codegen_flags: <defaults>
</compile_context>

<pallas_src>
import functools

import jax
import jax.numpy as jnp
from jax.experimental import pallas as pl
from jax.experimental.pallas import tpu as pltpu


# ----------------------------------------------------------------------------
# Fused forward kernel: encode -> reparameterize -> decode in one pass.
# ----------------------------------------------------------------------------
def _cvae_fwd_kernel(x_ref, c_ref, eps_ref,
                     enc_wx_ref, enc_wc_ref, enc_b_ref,
                     mulv_w_ref, mulv_b_ref,
                     dec_wz_ref, dec_wc_ref, dec_b_ref,
                     dec_w2_ref, dec_b2_ref,
                     recon_ref, mu_ref, logvar_ref, *, latent):
    x = x_ref[...]
    c = c_ref[...]

    # encoder hidden: relu(x @ Wx + c @ Wc + b)   (split-weight == concat form)
    h = jnp.dot(x, enc_wx_ref[...], preferred_element_type=jnp.float32)
    h = h + jnp.dot(c, enc_wc_ref[...], preferred_element_type=jnp.float32)
    h = jnp.maximum(h + enc_b_ref[...], 0.0)

    # fused mu / logvar projection: one matmul into [B, 2*latent], sliced here
    mulv = jnp.dot(h, mulv_w_ref[...], preferred_element_type=jnp.float32)
    mulv = mulv + mulv_b_ref[...]
    mu = mulv[:, :latent]
    logvar = mulv[:, latent:]

    # reparameterize: z = mu + exp(0.5 * logvar) * eps   (VPU/EUP, f32)
    z = mu + jnp.exp(0.5 * logvar) * eps_ref[...]

    # decoder: relu(z @ Wz + c @ Wc + b) @ W2 + b2
    h2 = jnp.dot(z, dec_wz_ref[...], preferred_element_type=jnp.float32)
    h2 = h2 + jnp.dot(c, dec_wc_ref[...], preferred_element_type=jnp.float32)
    h2 = jnp.maximum(h2 + dec_b_ref[...], 0.0)
    recon = jnp.dot(h2, dec_w2_ref[...], preferred_element_type=jnp.float32)
    recon = recon + dec_b2_ref[...]

    recon_ref[...] = recon.astype(recon_ref.dtype)
    mu_ref[...] = mu.astype(mu_ref.dtype)
    logvar_ref[...] = logvar.astype(logvar_ref.dtype)


def cvae_forward_pallas(x, cond, eps, p, *, max_block_b=512):
    """Single fused pallas_call for the whole CVAE forward."""
    B, d_in = x.shape
    d_cond = cond.shape[1]
    latent = eps.shape[1]

    bb = B if B <= max_block_b else max_block_b
    assert B % bb == 0, "batch must be divisible by the batch tile"
    grid = (B // bb,)

    def row_spec(n):
        # batch-tiled activations / outputs
        return pl.BlockSpec((bb, n), lambda i: (i, 0))

    def const_spec(arr):
        # full-array block, constant index -> stays VMEM-resident across tiles
        return pl.BlockSpec(arr.shape, lambda i: (0, 0))

    kernel = functools.partial(_cvae_fwd_kernel, latent=latent)
    return pl.pallas_call(
        kernel,
        out_shape=(jax.ShapeDtypeStruct((B, d_in), jnp.float32),
                   jax.ShapeDtypeStruct((B, latent), jnp.float32),
                   jax.ShapeDtypeStruct((B, latent), jnp.float32)),
        grid=grid,
        in_specs=[row_spec(d_in), row_spec(d_cond), row_spec(latent),
                  const_spec(p["enc_wx"]), const_spec(p["enc_wc"]), const_spec(p["enc_b"]),
                  const_spec(p["mulv_w"]), const_spec(p["mulv_b"]),
                  const_spec(p["dec_wz"]), const_spec(p["dec_wc"]), const_spec(p["dec_b"]),
                  const_spec(p["dec_w2"]), const_spec(p["dec_b2"])],
        out_specs=(row_spec(d_in), row_spec(latent), row_spec(latent)),
        compiler_params=pltpu.CompilerParams(
            dimension_semantics=("parallel",)),  # shards batch across v7x's 2 TCs
    )(x, cond, eps,
      p["enc_wx"], p["enc_wc"], p["enc_b"],
      p["mulv_w"], p["mulv_b"],
      p["dec_wz"], p["dec_wc"], p["dec_b"],
      p["dec_w2"], p["dec_b2"])


# ----------------------------------------------------------------------------
# Concrete CVAE built on the abstract ModelBase contract
# ----------------------------------------------------------------------------
class CVAE:
    """Minimal concrete CVAE matching ModelBase's documented interface."""

    def __init__(self, key, d_in=16, d_cond=4, hidden=32, latent=8):
        self.d_in, self.d_cond, self.hidden, self.latent = d_in, d_cond, hidden, latent
        keys = jax.random.split(key, 5)

        def init_w(k, shape):
            return jax.random.normal(k, shape, jnp.float32) / jnp.sqrt(shape[0])

        # canonical (concat-form) parameters, used for the pure-JAX reference
        self.enc_w1 = init_w(keys[0], (d_in + d_cond, hidden))
        self.enc_b1 = jnp.zeros((hidden,), jnp.float32)
        self.mu_w = init_w(keys[1], (hidden, latent))
        self.mu_b = jnp.zeros((latent,), jnp.float32)
        self.lv_w = init_w(keys[2], (hidden, latent))
        self.lv_b = jnp.zeros((latent,), jnp.float32)
        self.dec_w1 = init_w(keys[3], (latent + d_cond, hidden))
        self.dec_b1 = jnp.zeros((hidden,), jnp.float32)
        self.dec_w2 = init_w(keys[4], (hidden, d_in))
        self.dec_b2 = jnp.zeros((d_in,), jnp.float32)

        # kernel-layout parameters: row-split input weights (no concat in the
        # wrapper), fused mu||logvar projection, 2-D biases.
        self.params = {
            "enc_wx": self.enc_w1[:d_in],
            "enc_wc": self.enc_w1[d_in:],
            "enc_b": self.enc_b1.reshape(1, hidden),
            "mulv_w": jnp.concatenate([self.mu_w, self.lv_w], axis=1),
            "mulv_b": jnp.concatenate([self.mu_b, self.lv_b]).reshape(1, 2 * latent),
            "dec_wz": self.dec_w1[:latent],
            "dec_wc": self.dec_w1[latent:],
            "dec_b": self.dec_b1.reshape(1, hidden),
            "dec_w2": self.dec_w2,
            "dec_b2": self.dec_b2.reshape(1, d_in),
        }

    # Convenience methods matching the ModelBase interface.  The hot path
    # (forward) runs the single fused Pallas kernel; these mirror the same math.
    def encode(self, x, condition):
        h = jnp.maximum(jnp.concatenate([x, condition], -1) @ self.enc_w1 + self.enc_b1, 0.0)
        return h @ self.mu_w + self.mu_b, h @ self.lv_w + self.lv_b

    def reparameterize(self, mu, logvar, eps):
        return mu + jnp.exp(0.5 * logvar) * eps

    def decode(self, z, condition):
        h = jnp.maximum(jnp.concatenate([z, condition], -1) @ self.dec_w1 + self.dec_b1, 0.0)
        return h @ self.dec_w2 + self.dec_b2

    def forward(self, x, condition, eps):
        # One fused Pallas kernel: encode -> reparameterize -> decode.
        return cvae_forward_pallas(x, condition, eps, self.params)


# TODO(synk): loss_function / train_model / inference are training-time driver
# methods with no kernel-level compute defined in the base class; not kernelized.


if __name__ == "__main__":
    key = jax.random.PRNGKey(0)
    k_model, k_x, k_c, k_eps = jax.random.split(key, 4)

    B, D_IN, D_COND, HIDDEN, LATENT = 2, 16, 4, 32, 8
    model = CVAE(k_model, d_in=D_IN, d_cond=D_COND, hidden=HIDDEN, latent=LATENT)

    x = jax.random.normal(k_x, (B, D_IN), jnp.float32)
    cond = jax.random.normal(k_c, (B, D_COND), jnp.float32)
    eps = jax.random.normal(k_eps, (B, LATENT), jnp.float32)

    recon, mu, logvar = model.forward(x, cond, eps)
    jax.block_until_ready((recon, mu, logvar))

    assert recon.shape == (B, D_IN)
    assert mu.shape == (B, LATENT)
    assert logvar.shape == (B, LATENT)

    # Sanity-check against a plain JAX reference of the same math.
    h_ref = jnp.maximum(jnp.concatenate([x, cond], -1) @ model.enc_w1 + model.enc_b1, 0.0)
    mu_ref = h_ref @ model.mu_w + model.mu_b
    lv_ref = h_ref @ model.lv_w + model.lv_b
    z_ref = mu_ref + jnp.exp(0.5 * lv_ref) * eps
    h2_ref = jnp.maximum(jnp.concatenate([z_ref, cond], -1) @ model.dec_w1 + model.dec_b1, 0.0)
    recon_ref = h2_ref @ model.dec_w2 + model.dec_b2
    assert jnp.allclose(mu, mu_ref, atol=1e-5)
    assert jnp.allclose(logvar, lv_ref, atol=1e-5)
    assert jnp.allclose(recon, recon_ref, atol=1e-5)

    print("KERNEL_OK")
</pallas_src>

<mosaic_0001>
module attributes {stable_mosaic.version = 11 : i64} {
  func.func @_cvae_fwd_kernel(%arg0: i32, %arg1: memref<2x16xf32, #tpu.memory_space<vmem>>, %arg2: memref<2x4xf32, #tpu.memory_space<vmem>>, %arg3: memref<2x8xf32, #tpu.memory_space<vmem>>, %arg4: memref<16x32xf32, #tpu.memory_space<vmem>>, %arg5: memref<4x32xf32, #tpu.memory_space<vmem>>, %arg6: memref<1x32xf32, #tpu.memory_space<vmem>>, %arg7: memref<32x16xf32, #tpu.memory_space<vmem>>, %arg8: memref<1x16xf32, #tpu.memory_space<vmem>>, %arg9: memref<8x32xf32, #tpu.memory_space<vmem>>, %arg10: memref<4x32xf32, #tpu.memory_space<vmem>>, %arg11: memref<1x32xf32, #tpu.memory_space<vmem>>, %arg12: memref<32x16xf32, #tpu.memory_space<vmem>>, %arg13: memref<1x16xf32, #tpu.memory_space<vmem>>, %arg14: memref<2x16xf32, #tpu.memory_space<vmem>>, %arg15: memref<2x8xf32, #tpu.memory_space<vmem>>, %arg16: memref<2x8xf32, #tpu.memory_space<vmem>>) attributes {dimension_semantics = [#tpu.dimension_semantics<parallel>], iteration_bounds = array<i64: 1>, scalar_prefetch = 0 : i64, scratch_operands = 0 : i64, tpu.core_type = #tpu.core_type<tc>, window_params = [{transform_indices = @transform_0, window_bounds = array<i64: 2, 16>}, {transform_indices = @transform_1, window_bounds = array<i64: 2, 4>}, {transform_indices = @transform_2, window_bounds = array<i64: 2, 8>}, {pipeline_mode = #tpu.pipeline_mode<synchronous>, transform_indices = @transform_3, window_bounds = array<i64: 16, 32>}, {pipeline_mode = #tpu.pipeline_mode<synchronous>, transform_indices = @transform_4, window_bounds = array<i64: 4, 32>}, {pipeline_mode = #tpu.pipeline_mode<synchronous>, transform_indices = @transform_5, window_bounds = array<i64: 1, 32>}, {pipeline_mode = #tpu.pipeline_mode<synchronous>, transform_indices = @transform_6, window_bounds = array<i64: 32, 16>}, {pipeline_mode = #tpu.pipeline_mode<synchronous>, transform_indices = @transform_7, window_bounds = array<i64: 1, 16>}, {pipeline_mode = #tpu.pipeline_mode<synchronous>, transform_indices = @transform_8, window_bounds = array<i64: 8, 32>}, {pipeline_mode = #tpu.pipeline_mode<synchronous>, transform_indices = @transform_9, window_bounds = array<i64: 4, 32>}, {pipeline_mode = #tpu.pipeline_mode<synchronous>, transform_indices = @transform_10, window_bounds = array<i64: 1, 32>}, {pipeline_mode = #tpu.pipeline_mode<synchronous>, transform_indices = @transform_11, window_bounds = array<i64: 32, 16>}, {pipeline_mode = #tpu.pipeline_mode<synchronous>, transform_indices = @transform_12, window_bounds = array<i64: 1, 16>}, {transform_indices = @transform_13, window_bounds = array<i64: 2, 16>}, {transform_indices = @transform_14, window_bounds = array<i64: 2, 8>}, {transform_indices = @transform_15, window_bounds = array<i64: 2, 8>}]} {
    %c0 = arith.constant 0 : index
    %c0_0 = arith.constant 0 : index
    %0 = vector.load %arg1[%c0, %c0_0] : memref<2x16xf32, #tpu.memory_space<vmem>>, vector<2x16xf32>
    %c0_1 = arith.constant 0 : index
    %c0_2 = arith.constant 0 : index
    %1 = vector.load %arg2[%c0_1, %c0_2] : memref<2x4xf32, #tpu.memory_space<vmem>>, vector<2x4xf32>
    %c0_3 = arith.constant 0 : index
    %c0_4 = arith.constant 0 : index
    %2 = vector.load %arg4[%c0_3, %c0_4] : memref<16x32xf32, #tpu.memory_space<vmem>>, vector<16x32xf32>
    %cst = arith.constant dense<0.000000e+00> : vector<2x32xf32>
    %3 = tpu.matmul %0, %2, %cst {dimension_numbers = #tpu.dot_dimension_numbers<[1], [0], [0], [1], [0, 0, 1, 1], [], []>} : vector<2x16xf32>, vector<16x32xf32>, vector<2x32xf32> -> vector<2x32xf32>
    %c0_5 = arith.constant 0 : index
    %c0_6 = arith.constant 0 : index
    %4 = vector.load %arg5[%c0_5, %c0_6] : memref<4x32xf32, #tpu.memory_space<vmem>>, vector<4x32xf32>
    %cst_7 = arith.constant dense<0.000000e+00> : vector<2x32xf32>
    %5 = tpu.matmul %1, %4, %cst_7 {dimension_numbers = #tpu.dot_dimension_numbers<[1], [0], [0], [1], [0, 0, 1, 1], [], []>} : vector<2x4xf32>, vector<4x32xf32>, vector<2x32xf32> -> vector<2x32xf32>
    %6 = arith.addf %3, %5 : vector<2x32xf32>
    %c0_8 = arith.constant 0 : index
    %c0_9 = arith.constant 0 : index
    %7 = vector.load %arg6[%c0_8, %c0_9] : memref<1x32xf32, #tpu.memory_space<vmem>>, vector<1x32xf32>
    %8 = vector.broadcast %7 : vector<1x32xf32> to vector<2x32xf32>
    %9 = arith.addf %6, %8 : vector<2x32xf32>
    %cst_10 = arith.constant 0.000000e+00 : f32
    %10 = vector.broadcast %cst_10 : f32 to vector<2x32xf32>
    %11 = arith.maximumf %9, %10 : vector<2x32xf32>
    %c0_11 = arith.constant 0 : index
    %c0_12 = arith.constant 0 : index
    %12 = vector.load %arg7[%c0_11, %c0_12] : memref<32x16xf32, #tpu.memory_space<vmem>>, vector<32x16xf32>
    %cst_13 = arith.constant dense<0.000000e+00> : vector<2x16xf32>
    %13 = tpu.matmul %11, %12, %cst_13 {dimension_numbers = #tpu.dot_dimension_numbers<[1], [0], [0], [1], [0, 0, 1, 1], [], []>} : vector<2x32xf32>, vector<32x16xf32>, vector<2x16xf32> -> vector<2x16xf32>
    %c0_14 = arith.constant 0 : index
    %c0_15 = arith.constant 0 : index
    %14 = vector.load %arg8[%c0_14, %c0_15] : memref<1x16xf32, #tpu.memory_space<vmem>>, vector<1x16xf32>
    %15 = vector.broadcast %14 : vector<1x16xf32> to vector<2x16xf32>
    %16 = arith.addf %13, %15 : vector<2x16xf32>
    %17 = vector.extract_strided_slice %16 {offsets = [0, 0], sizes = [2, 8], strides = [1, 1]} : vector<2x16xf32> to vector<2x8xf32>
    %18 = vector.extract_strided_slice %16 {offsets = [0, 8], sizes = [2, 8], strides = [1, 1]} : vector<2x16xf32> to vector<2x8xf32>
    %cst_16 = arith.constant 5.000000e-01 : f32
    %19 = vector.broadcast %cst_16 : f32 to vector<2x8xf32>
    %20 = arith.mulf %19, %18 : vector<2x8xf32>
    %21 = math.exp %20 : vector<2x8xf32>
    %c0_17 = arith.constant 0 : index
    %c0_18 = arith.constant 0 : index
    %22 = vector.load %arg3[%c0_17, %c0_18] : memref<2x8xf32, #tpu.memory_space<vmem>>, vector<2x8xf32>
    %23 = arith.mulf %21, %22 : vector<2x8xf32>
    %24 = arith.addf %17, %23 : vector<2x8xf32>
    %c0_19 = arith.constant 0 : index
    %c0_20 = arith.constant 0 : index
    %25 = vector.load %arg9[%c0_19, %c0_20] : memref<8x32xf32, #tpu.memory_space<vmem>>, vector<8x32xf32>
    %cst_21 = arith.constant dense<0.000000e+00> : vector<2x32xf32>
    %26 = tpu.matmul %24, %25, %cst_21 {dimension_numbers = #tpu.dot_dimension_numbers<[1], [0], [0], [1], [0, 0, 1, 1], [], []>} : vector<2x8xf32>, vector<8x32xf32>, vector<2x32xf32> -> vector<2x32xf32>
    %c0_22 = arith.constant 0 : index
    %c0_23 = arith.constant 0 : index
    %27 = vector.load %arg10[%c0_22, %c0_23] : memref<4x32xf32, #tpu.memory_space<vmem>>, vector<4x32xf32>
    %cst_24 = arith.constant dense<0.000000e+00> : vector<2x32xf32>
    %28 = tpu.matmul %1, %27, %cst_24 {dimension_numbers = #tpu.dot_dimension_numbers<[1], [0], [0], [1], [0, 0, 1, 1], [], []>} : vector<2x4xf32>, vector<4x32xf32>, vector<2x32xf32> -> vector<2x32xf32>
    %29 = arith.addf %26, %28 : vector<2x32xf32>
    %c0_25 = arith.constant 0 : index
    %c0_26 = arith.constant 0 : index
    %30 = vector.load %arg11[%c0_25, %c0_26] : memref<1x32xf32, #tpu.memory_space<vmem>>, vector<1x32xf32>
    %31 = vector.broadcast %30 : vector<1x32xf32> to vector<2x32xf32>
    %32 = arith.addf %29, %31 : vector<2x32xf32>
    %cst_27 = arith.constant 0.000000e+00 : f32
    %33 = vector.broadcast %cst_27 : f32 to vector<2x32xf32>
    %34 = arith.maximumf %32, %33 : vector<2x32xf32>
    %c0_28 = arith.constant 0 : index
    %c0_29 = arith.constant 0 : index
    %35 = vector.load %arg12[%c0_28, %c0_29] : memref<32x16xf32, #tpu.memory_space<vmem>>, vector<32x16xf32>
    %cst_30 = arith.constant dense<0.000000e+00> : vector<2x16xf32>
    %36 = tpu.matmul %34, %35, %cst_30 {dimension_numbers = #tpu.dot_dimension_numbers<[1], [0], [0], [1], [0, 0, 1, 1], [], []>} : vector<2x32xf32>, vector<32x16xf32>, vector<2x16xf32> -> vector<2x16xf32>
    %c0_31 = arith.constant 0 : index
    %c0_32 = arith.constant 0 : index
    %37 = vector.load %arg13[%c0_31, %c0_32] : memref<1x16xf32, #tpu.memory_space<vmem>>, vector<1x16xf32>
    %38 = vector.broadcast %37 : vector<1x16xf32> to vector<2x16xf32>
    %39 = arith.addf %36, %38 : vector<2x16xf32>
    %c0_33 = arith.constant 0 : index
    %c0_34 = arith.constant 0 : index
    %40 = vector.load %arg14[%c0_33, %c0_34] : memref<2x16xf32, #tpu.memory_space<vmem>>, vector<2x16xf32>
    tpu.vector_store %arg14[%c0_33, %c0_34], %39 {strides = array<i32>} : memref<2x16xf32, #tpu.memory_space<vmem>>, vector<2x16xf32>,
    %c0_35 = arith.constant 0 : index
    %c0_36 = arith.constant 0 : index
    %41 = vector.load %arg15[%c0_35, %c0_36] : memref<2x8xf32, #tpu.memory_space<vmem>>, vector<2x8xf32>
    tpu.vector_store %arg15[%c0_35, %c0_36], %17 {strides = array<i32>} : memref<2x8xf32, #tpu.memory_space<vmem>>, vector<2x8xf32>,
    %c0_37 = arith.constant 0 : index
    %c0_38 = arith.constant 0 : index
    %42 = vector.load %arg16[%c0_37, %c0_38] : memref<2x8xf32, #tpu.memory_space<vmem>>, vector<2x8xf32>
    tpu.vector_store %arg16[%c0_37, %c0_38], %18 {strides = array<i32>} : memref<2x8xf32, #tpu.memory_space<vmem>>, vector<2x8xf32>,
    return
  }
  func.func @transform_0(%arg0: i32) -> (i32, i32) {
    %c0_i32 = arith.constant 0 : i32
    %c0_i32_0 = arith.constant 0 : i32
    return %arg0, %c0_i32 : i32, i32
  }
  func.func @transform_1(%arg0: i32) -> (i32, i32) {
    %c0_i32 = arith.constant 0 : i32
    %c0_i32_0 = arith.constant 0 : i32
    return %arg0, %c0_i32 : i32, i32
  }
  func.func @transform_2(%arg0: i32) -> (i32, i32) {
    %c0_i32 = arith.constant 0 : i32
    %c0_i32_0 = arith.constant 0 : i32
    return %arg0, %c0_i32 : i32, i32
  }
  func.func @transform_3(%arg0: i32) -> (i32, i32) {
    %c0_i32 = arith.constant 0 : i32
    %c0_i32_0 = arith.constant 0 : i32
    %c0_i32_1 = arith.constant 0 : i32
    return %c0_i32, %c0_i32_0 : i32, i32
  }
  func.func @transform_4(%arg0: i32) -> (i32, i32) {
    %c0_i32 = arith.constant 0 : i32
    %c0_i32_0 = arith.constant 0 : i32
    %c0_i32_1 = arith.constant 0 : i32
    return %c0_i32, %c0_i32_0 : i32, i32
  }
  func.func @transform_5(%arg0: i32) -> (i32, i32) {
    %c0_i32 = arith.constant 0 : i32
    %c0_i32_0 = arith.constant 0 : i32
    %c0_i32_1 = arith.constant 0 : i32
    return %c0_i32, %c0_i32_0 : i32, i32
  }
  func.func @transform_6(%arg0: i32) -> (i32, i32) {
    %c0_i32 = arith.constant 0 : i32
    %c0_i32_0 = arith.constant 0 : i32
    %c0_i32_1 = arith.constant 0 : i32
    return %c0_i32, %c0_i32_0 : i32, i32
  }
  func.func @transform_7(%arg0: i32) -> (i32, i32) {
    %c0_i32 = arith.constant 0 : i32
    %c0_i32_0 = arith.constant 0 : i32
    %c0_i32_1 = arith.constant 0 : i32
    return %c0_i32, %c0_i32_0 : i32, i32
  }
  func.func @transform_8(%arg0: i32) -> (i32, i32) {
    %c0_i32 = arith.constant 0 : i32
    %c0_i32_0 = arith.constant 0 : i32
    %c0_i32_1 = arith.constant 0 : i32
    return %c0_i32, %c0_i32_0 : i32, i32
  }
  func.func @transform_9(%arg0: i32) -> (i32, i32) {
    %c0_i32 = arith.constant 0 : i32
    %c0_i32_0 = arith.constant 0 : i32
    %c0_i32_1 = arith.constant 0 : i32
    return %c0_i32, %c0_i32_0 : i32, i32
  }
  func.func @transform_10(%arg0: i32) -> (i32, i32) {
    %c0_i32 = arith.constant 0 : i32
    %c0_i32_0 = arith.constant 0 : i32
    %c0_i32_1 = arith.constant 0 : i32
    return %c0_i32, %c0_i32_0 : i32, i32
  }
  func.func @transform_11(%arg0: i32) -> (i32, i32) {
    %c0_i32 = arith.constant 0 : i32
    %c0_i32_0 = arith.constant 0 : i32
    %c0_i32_1 = arith.constant 0 : i32
    return %c0_i32, %c0_i32_0 : i32, i32
  }
  func.func @transform_12(%arg0: i32) -> (i32, i32) {
    %c0_i32 = arith.constant 0 : i32
    %c0_i32_0 = arith.constant 0 : i32
    %c0_i32_1 = arith.constant 0 : i32
    return %c0_i32, %c0_i32_0 : i32, i32
  }
  func.func @transform_13(%arg0: i32) -> (i32, i32) {
    %c0_i32 = arith.constant 0 : i32
    %c0_i32_0 = arith.constant 0 : i32
    return %arg0, %c0_i32 : i32, i32
  }
  func.func @transform_14(%arg0: i32) -> (i32, i32) {
    %c0_i32 = arith.constant 0 : i32
    %c0_i32_0 = arith.constant 0 : i32
    return %arg0, %c0_i32 : i32, i32
  }
  func.func @transform_15(%arg0: i32) -> (i32, i32) {
    %c0_i32 = arith.constant 0 : i32
    %c0_i32_0 = arith.constant 0 : i32
    return %arg0, %c0_i32 : i32, i32
  }
}

</mosaic_0001>

<bundles_post_ra>
// kernel: tpu_custom_call.1
= control target key start
LH: loop header
LB: loop body
LE: loop exit
PB: predicated region body
PF: predicated region fallthrough
CT: control target
= control target key end

     0   :  { %21 = vsyncpa [#allocation3], 0  ;;  %vm58_vm0 = vcmask 1043456   ;;  %vm54_vm1 = vcmask 31744   ;;  %v776_v1 = vmov 0.0   ;;  %vm777_vm2 = vmmov 0   ;;  %s977_s0 = inlined_call_operand.vmem [shape: f32[2,16], index: 0, kind: input, shape index: {}]   ;;  %s978_s1 = inlined_call_operand.vmem [shape: f32[2,4], index: 1, kind: input, shape index: {}]   ;;  %s979_s2 = inlined_call_operand.vmem [shape: f32[2,8], index: 2, kind: input, shape index: {}]   ;;  %s980_s3 = inlined_call_operand.vmem [shape: f32[16,32], index: 3, kind: input, shape index: {}]   ;;  %s981_s4 = inlined_call_operand.vmem [shape: f32[4,32], index: 4, kind: input, shape index: {}]   ;;  %s982_s5 = inlined_call_operand.vmem [shape: f32[1,32], index: 5, kind: input, shape index: {}]   ;;  %s983_s6 = inlined_call_operand.vmem [shape: f32[32,16], index: 6, kind: input, shape index: {}]   ;;  %s984_s7 = inlined_call_operand.vmem [shape: f32[1,16], index: 7, kind: input, shape index: {}]   ;;  %s985_s8 = inlined_call_operand.vmem [shape: f32[8,32], index: 8, kind: input, shape index: {}]   ;;  %s986_s9 = inlined_call_operand.vmem [shape: f32[4,32], index: 9, kind: input, shape index: {}]   ;;  %s987_s10 = inlined_call_operand.vmem [shape: f32[1,32], index: 10, kind: input, shape index: {}]   ;;  %s988_s11 = inlined_call_operand.vmem [shape: f32[32,16], index: 11, kind: input, shape index: {}]   ;;  %s989_s12 = inlined_call_operand.vmem [shape: f32[1,16], index: 12, kind: input, shape index: {}]   ;;  %s990_s13 = inlined_call_operand.hbm [shape: f32[2,16], index: 13, kind: output, shape index: {0}]   ;;  %s991_s14 = inlined_call_operand.hbm [shape: f32[2,8], index: 14, kind: output, shape index: {1}]   ;;  %s992_s15 = inlined_call_operand.hbm [shape: f32[2,8], index: 15, kind: output, shape index: {2}]  }
   0x1   :  { %v53_v0 = vld [vmem:[%s981_s4] sm:$0xf]  ;;  %637 = vmatprep.subr.mxu1 %v776_v1  ;;  %639 = vmatprep.mubr.msk.f32.mxu1 %vm777_vm2, %v776_v1  ;;  %v52_v4 = vld [vmem:[%s980_s3 + $0x8] sm:$0xff]  ;;  %v778_v6 = vmov 0.0|0.0  }
   0x2   :  { %v50_v2 = vld [vmem:[%s978_s1] sm:$0x3]  ;;  %638 = vmatpush3.msk.msra.mxu1 %vm58_vm0, %v53_v0  ;;  %684 = vmatprep.subr.bf16.mxu0 %v778_v6 }
   0x3   :  { %v51_v3 = vld [vmem:[%s980_s3] sm:$0xff] }
   0x4   :  { %v682_v5 = vpack.c.bf16 %v52_v4, %v51_v3 }
   0x5   :  { %22 = vsyncpa [#allocation5], 0  ;;  %640 = vmatmul.mubr.msk.f32.vlgmr.msra.gmra.mrb[0].mxu1 %vm54_vm1, %v50_v2  ;;  %681 = vmatprep.subr.bf16.mxu1 %v778_v6  ;;  %v49_v7 = vld [vmem:[%s977_s0] sm:$0x3]  ;;  %vm132_vm3 = vcmask 130048   ;;  %v216_v9 = vld [vmem:[%s983_s6 + $0x8] sm:$0xff] }
   0x6   :  { %683 = vmatpush3.bf16.msra.mxu1 %v682_v5  ;;  %646 = vmatprep.mubr.msk.f32.mxu1 %vm777_vm2, %v776_v1  ;;  %v215_v8 = vld [vmem:[%s983_s6] sm:$0xff]  ;;  %v217_v11 = vld [vmem:[%s983_s6 + $0x10] sm:$0xff]  ;;  %v218_v12 = vld [vmem:[%s983_s6 + $0x18] sm:$0xff]  ;;  %s779_s19 = smov 8   ;;  %vm226_vm4 = vcmask 261120   ;;  %vm558_vm5 = vcmask 58368  }
   0x7   :  { %657 = vmatprep.mubr.msk.f32.mxu0 %vm777_vm2, %v776_v1  ;;  %660 = vmatprep.subr.mxu1 %v776_v1  ;;  %v685_v10 = vpack.c.bf16 %v216_v9, %v215_v8  ;;  %v688_v13 = vpack.c.bf16 %v218_v12, %v217_v11  ;;  %v303_v14 = vld [vmem:[%s979_s2] sm:$0x3]  ;;  %vm389_vm6 = vcmask 64512   ;;  %v473_v40 = vld [vmem:[%s988_s11 + $0x8] sm:$0xff]  ;;  %v474_v42 = vld [vmem:[%s988_s11 + $0x10] sm:$0xff]  ;;  %s781_s29 = smov [#allocation4]  }
   0x8   :  { %305 = vrot.lane.b32.xlu0 %v303_v14, %s779_s19  ;;  %v609_v18 = vld [vmem:[%s982_s5] ss:$0 sm:$0xff]  ;;  %v475_v43 = vld [vmem:[%s988_s11 + $0x18] sm:$0xff]  ;;  %s581_s30 = sshll.u32 %s781_s29, 4  ;;  %s582_s30 = int_to_ptr.vmem [resolvable:$true] %s581_s30 }
   0x9   :  { %647 = vmatmul.mubr.msk.f32.vlgmr.msra.gmra.mrb[2].mxu1 %vm132_vm3, %v49_v7  ;;  %686 = vmatpush3.bf16.msra.mxu0 %v685_v10  ;;  %v315_v23 = vld [vmem:[%s986_s9] sm:$0xf]  ;;  %s780_s9 = smov 120   ;;  %v694_v44 = vpack.c.bf16 %v475_v43, %v474_v42  ;;  %s706_s16 = scalar_lea.vmem %s582_s30, 32 }
   0xa   :  { %662 = vmatprep.mubr.msk.f32.mxu1 %vm777_vm2, %v776_v1  ;;  %687 = vmatprep.subr.bf16.mxu0 %v778_v6  ;;  %v314_v24 = vld [vmem:[%s985_s8] sm:$0xff]  ;;  %p707_p0 = scmp.ne.s32.totalorder %s582_s30, %s706_s16  ;;  %p711_p1 = scmp.lt.s32.totalorder %s582_s30, %s582_s30 }
   0xb   :  { %661 = vmatpush3.msk.msra.mxu1 %vm58_vm0, %v315_v23  ;;  %v610_v25 = vld [vmem:[%s984_s7] ss:$0 sm:$0xff]  ;;  %p712_p2 = scmp.lt.s32.totalorder %s706_s16, %s706_s16 }
   0xc   :  { %665 = vmatprep.subr.mxu1 %v776_v1  ;;  %v472_v39 = vld [vmem:[%s988_s11] sm:$0xff] }
   0xd   :  { %689 = vmatpush3.bf16.msra.mxu0 %v688_v13  ;;  %663 = vmatmul.mubr.msk.f32.vlgmr.msra.gmra.mrb[4].mxu1 %vm54_vm1, %v50_v2  ;;  %v691_v41 = vpack.c.bf16 %v473_v40, %v472_v39  ;;  %v615_v46 = vld [vmem:[%s987_s10] ss:$0 sm:$0xff]  ;;  %p713_p3 = por %p712_p2, %p711_p1 }
   0xe   :  { %690 = vmatprep.subr.bf16.mxu0 %v778_v6  ;;  %666 = vmatpush3.msra.mxu1 %v314_v24 }
   0xf   :  { %667 = vmatprep.mubr.msk.f32.mxu1 %vm777_vm2, %v776_v1  ;;  %p714_p4 = pnand %p713_p3, %p707_p0 }
  0x7a   :  { %v306_v31 = vpop.permute.xlu0 %305 }
  0xd8   :  { %v128_v15 = vpop.f32.mrb[0].mxu1 }
  0xd9   :  { %v641_v16 = vpop.f32.mrb[1].mxu1 }
  0xdc   :  { %v202_v17 = vpop.f32.mrb[2].mxu1 }
  0xdd   :  { %v203_v19 = vadd.f32 %v202_v17, %v128_v15  ;;  %v648_v20 = vpop.f32.mrb[3].mxu1 }
  0xdf   :  { %v213_v21 = vadd.f32 %v609_v18, %v203_v19 }
  0xe0   :  { %v385_v37 = vpop.f32.mrb[4].mxu1 }
  0xe1   :  { %v214_v22 = vmax.f32 %v213_v21, 0.0  ;;  %v664_v38 = vpop.f32.mrb[5].mxu1 }
  0xe3   :  { %658 = vmatmul.mubr.msk.f32.vlgmr.msra.gmra.mrb[0].mxu0 %vm226_vm4, %v214_v22 }
  0xe4   :  { %678 = vmatprep.mubr.msk.f32.mxu0 %vm777_vm2, %v776_v1  ;;  %692 = vmatpush3.bf16.msra.mxu0 %v691_v41 }
  0xe5   :  { %693 = vmatprep.subr.bf16.mxu0 %v778_v6 }
  0xe8   :  { %695 = vmatpush3.bf16.msra.mxu0 %v694_v44 }
 0x1b6   :  { %v296_v26 = vpop.f32.mrb[0].mxu0 }
 0x1b7   :  { %v297_v27 = vadd.f32 %v610_v25, %v296_v26  ;;  %v659_v28 = vpop.f32.mrb[1].mxu0 }
 0x1b9   :  { %v300_v29 = vmul.f32 0.5, %v297_v27  ;;  %561 = vrot.lane.b32.xlu1 %v297_v27, %s780_s9  ;;  %559 = vst.msk [vmem:[#allocation4] sm:$0x3] %vm558_vm5, %v297_v27 }
 0x1bb   :  { %v301_v30 = vmul.f32 1.442695, %v300_v29 }
 0x1bd   :  { %704 = vpow2.f32 %v301_v30 }
 0x1c7   :  { %v705_v32 = vpop.eup %704 }
 0x1c8   :  { %v308_v33 = vmul.f32 %v705_v32, %v306_v31 }
 0x1ca   :  { %310 = vrot.lane.b32.xlu0 %v308_v33, %s780_s9 }
 0x22b   :  { %v562_v34 = vpop.permute.xlu1 %561 }
 0x22c   :  { %564 = vst.msk [vmem:[#allocation6] sm:$0x3] %vm558_vm5, %v562_v34 }
 0x23c   :  { %v311_v35 = vpop.permute.xlu0 %310 }
 0x23d   :  { %v313_v36 = vadd.f32 %v311_v35, %v297_v27 }
 0x23f   :  { %668 = vmatmul.mubr.msk.f32.vlgmr.msra.gmra.mrb[6].mxu1 %vm389_vm6, %v313_v36 }
 0x312   :  { %v459_v45 = vpop.f32.mrb[6].mxu1 }
 0x313   :  { %v460_v47 = vadd.f32 %v459_v45, %v385_v37  ;;  %v669_v48 = vpop.f32.mrb[7].mxu1 }
 0x315   :  { %v470_v49 = vadd.f32 %v615_v46, %v460_v47 }
 0x317   :  { %v471_v50 = vmax.f32 %v470_v49, 0.0 }
 0x319   :  { %679 = vmatmul.mubr.msk.f32.vlgmr.msra.gmra.mrb[2].mxu0 %vm226_vm4, %v471_v50 }
 0x31a   :  { %717 = shalt.err (!%p714_p4)
}
 0x31b   :  { %s718_s10 = scalar_lea.hbm %s991_s14, 32 }
 0x31c   :  { %p719_p5 = scmp.ne.s32.totalorder %s991_s14, %s718_s10  ;;  %p722_p6 = scmp.lt.u32.totalorder %s718_s10, %s991_s14 }
 0x31e   :  { %p724_p7 = pnand %p722_p6, %p719_p5 }
 0x320   :  { %727 = shalt.err (!%p724_p7)
}
 0x321   :  { %584 = dma.vmem_to_hbm [thread:$0]  %s582_s30, 32, %s991_s14, [#allocation5]  }
 0x322   :  { %s782_s22 = smov [#allocation6]  }
 0x323   :  { %s591_s23 = sshll.u32 %s782_s22, 4  ;;  %s592_s23 = int_to_ptr.vmem [resolvable:$true] %s591_s23 }
 0x324   :  { %s728_s5 = scalar_lea.vmem %s592_s23, 32  ;;  %p733_p9 = scmp.lt.s32.totalorder %s592_s23, %s592_s23 }
 0x325   :  { %p729_p8 = scmp.ne.s32.totalorder %s592_s23, %s728_s5  ;;  %p734_p10 = scmp.lt.s32.totalorder %s728_s5, %s728_s5 }
 0x327   :  { %p735_p11 = por %p734_p10, %p733_p9 }
 0x329   :  { %p736_p12 = pnand %p735_p11, %p729_p8 }
 0x32b   :  { %739 = shalt.err (!%p736_p12)
}
 0x32c   :  { %s740_s7 = scalar_lea.hbm %s992_s15, 32 }
 0x32d   :  { %p741_p13 = scmp.ne.s32.totalorder %s992_s15, %s740_s7  ;;  %p744_p0 = scmp.lt.u32.totalorder %s740_s7, %s992_s15 }
 0x32f   :  { %p746_p1 = pnand %p744_p0, %p741_p13 }
 0x331   :  { %749 = shalt.err (!%p746_p1)
}
 0x332   :  { %594 = dma.vmem_to_hbm [thread:$0]  %s592_s23, 32, %s992_s15, [#allocation5]   ;;  %v616_v51 = vld [vmem:[%s989_s12] ss:$0 sm:$0xff]  ;;  %vm556_vm7 = vcmask 123904  }
 0x333   :  { %s783_s28 = smov [#allocation2]  }
 0x334   :  { %s571_s0 = sshll.u32 %s783_s28, 4  ;;  %s572_s0 = int_to_ptr.vmem [resolvable:$true] %s571_s0 }
 0x335   :  { %s750_s29 = scalar_lea.vmem %s572_s0, 32  ;;  %p755_p3 = scmp.lt.s32.totalorder %s572_s0, %s572_s0 }
 0x336   :  { %p751_p2 = scmp.ne.s32.totalorder %s572_s0, %s750_s29  ;;  %p756_p4 = scmp.lt.s32.totalorder %s750_s29, %s750_s29 }
 0x338   :  { %p757_p5 = por %p756_p4, %p755_p3 }
 0x33a   :  { %p758_p6 = pnand %p757_p5, %p751_p2 }
 0x3ec   :  { %v552_v52 = vpop.f32.mrb[2].mxu0 }
 0x3ed   :  { %v553_v53 = vadd.f32 %v616_v51, %v552_v52  ;;  %v680_v54 = vpop.f32.mrb[3].mxu0 }
 0x3ef   :  { %557 = vst.msk [vmem:[#allocation2] sm:$0x3] %vm556_vm7, %v553_v53 }
 0x3f0   :  { %761 = shalt.err (!%p758_p6)
}
 0x3f1   :  { %s762_s16 = scalar_lea.hbm %s990_s13, 32 }
 0x3f2   :  { %p763_p7 = scmp.ne.s32.totalorder %s990_s13, %s762_s16  ;;  %p766_p8 = scmp.lt.u32.totalorder %s762_s16, %s990_s13 }
 0x3f4   :  { %p768_p9 = pnand %p766_p8, %p763_p7 }
 0x3f6   :  { %771 = shalt.err (!%p768_p9)
}
 0x3f7   :  { %574 = dma.vmem_to_hbm [thread:$0]  %s572_s0, 32, %s990_s13, [#allocation3]  }
 0x3f8   :  { %772 = dma.done.wait [#allocation3], 32  }
 0x3f9   :  { %773 = vsyncadd [#allocation3], 4294967264 }
 0x3fa   :  { %774 = dma.done.wait [#allocation5], 64  }
 0x3fb   :  { %775 = vsyncadd [#allocation5], 4294967232 }
 0x3fc   :  { %604 = vsyncpa [#allocation3], 1 }
 0x3fd   :  { %605 = vsyncpa [#allocation5], 1 }

</bundles_post_ra>
